<compile_context>
chip_gen: v7x
topology: tpu7x:2x2x1
jax: 0.10.0
libtpu: 0.0.40
codegen_flags: <defaults>
</compile_context>

<pallas_src>
import jax
import jax.numpy as jnp
from jax.experimental import pallas as pl
from jax.experimental.pallas import tpu as pltpu


def residual_block_kernel(x_ref, w1_ref, b1_ref, w2_ref, b2_ref, o_ref):
    # One (TM, F) batch tile per grid step; weights are VMEM-resident.
    x = x_ref[...]                                  # (TM, F) f32 (kept for residual)
    xb = x.astype(jnp.bfloat16)
    h = jnp.dot(xb, w1_ref[...], preferred_element_type=jnp.float32) + b1_ref[...]
    h = jnp.maximum(h, 0.0)                         # ReLU(inplace=True) semantics
    y = jnp.dot(h.astype(jnp.bfloat16), w2_ref[...],
                preferred_element_type=jnp.float32) + b2_ref[...]
    o_ref[...] = (x + y).astype(o_ref.dtype)        # residual add on the VPU


def residual_block(x, w1, b1, w2, b2, *, tm=None):
    """x: [B, F] f32; w1: [F, H]; b1: [H]; w2: [H, F]; b2: [F]."""
    B, F = x.shape
    H = w1.shape[1]

    # Batch tile: 256 rows (fills a v6e/v7x 256-row MXU; 2x128 tiles on v5e) when
    # the batch is big enough, otherwise round the whole batch up to a sublane
    # multiple and run a single tile.
    if tm is None:
        tm = 256 if B >= 256 else max(8, ((B + 7) // 8) * 8)
    n_tiles = pl.cdiv(B, tm)
    B_pad = n_tiles * tm
    x_in = x if B_pad == B else jnp.zeros((B_pad, F), x.dtype).at[:B].set(x)

    # bf16 weights (halve HBM traffic, native MXU rate); biases stay f32 and are
    # added to the f32 accumulator.
    w1b = w1.astype(jnp.bfloat16)
    w2b = w2.astype(jnp.bfloat16)
    b1f = b1.reshape(1, H).astype(jnp.float32)
    b2f = b2.reshape(1, F).astype(jnp.float32)

    out = pl.pallas_call(
        residual_block_kernel,
        out_shape=jax.ShapeDtypeStruct((B_pad, F), x.dtype),
        grid=(n_tiles,),
        in_specs=[
            pl.BlockSpec((tm, F), lambda i: (i, 0)),   # x: tiled over batch
            pl.BlockSpec((F, H), lambda i: (0, 0)),    # W1: resident across steps
            pl.BlockSpec((1, H), lambda i: (0, 0)),    # b1
            pl.BlockSpec((H, F), lambda i: (0, 0)),    # W2: resident across steps
            pl.BlockSpec((1, F), lambda i: (0, 0)),    # b2
        ],
        out_specs=pl.BlockSpec((tm, F), lambda i: (i, 0)),
        compiler_params=pltpu.CompilerParams(
            dimension_semantics=("parallel",),         # shard batch tiles on v7x's 2 TCs
        ),
    )(x_in, w1b, b1f, w2b, b2f)
    return out[:B]


def reference_f32(x, w1, b1, w2, b2):
    h = jnp.maximum(x @ w1 + b1[None, :], 0.0)
    return x + (h @ w2 + b2[None, :])


def reference_bf16(x, w1, b1, w2, b2):
    # Emulates the kernel's numerics: bf16 matmul inputs, f32 accumulation.
    xb = x.astype(jnp.bfloat16)
    h = jnp.dot(xb, w1.astype(jnp.bfloat16),
                preferred_element_type=jnp.float32) + b1[None, :]
    h = jnp.maximum(h, 0.0)
    y = jnp.dot(h.astype(jnp.bfloat16), w2.astype(jnp.bfloat16),
                preferred_element_type=jnp.float32) + b2[None, :]
    return x + y


if __name__ == "__main__":
    key = jax.random.PRNGKey(0)
    B, F, H = 8, 256, 1024   # hidden=1024 fixed by the module definition

    k_x, k_w1, k_w2 = jax.random.split(key, 3)
    x = jax.random.normal(k_x, (B, F), dtype=jnp.float32)

    # nn.init.normal_(weight, std=0.02); bias = 0  (deterministic synthetic init)
    w1 = 0.02 * jax.random.normal(k_w1, (F, H), dtype=jnp.float32)
    b1 = jnp.zeros((H,), dtype=jnp.float32)
    w2 = 0.02 * jax.random.normal(k_w2, (H, F), dtype=jnp.float32)
    b2 = jnp.zeros((F,), dtype=jnp.float32)

    out = residual_block(x, w1, b1, w2, b2)
    jax.block_until_ready(out)

    assert out.shape == (B, F)
    # Tight check against a bf16-input / f32-accum reference (same numerics).
    ref_b = reference_bf16(x, w1, b1, w2, b2)
    assert jnp.allclose(out, ref_b, atol=2e-3, rtol=2e-3)
    # Loose check against the pure-f32 PyTorch-equivalent math.
    ref_f = reference_f32(x, w1, b1, w2, b2)
    assert jnp.allclose(out, ref_f, atol=5e-2, rtol=5e-2)
    print("KERNEL_OK")
</pallas_src>

<mosaic_0001>
module attributes {stable_mosaic.version = 11 : i64} {
  func.func @residual_block_kernel(%arg0: i32, %arg1: memref<8x256xf32, #tpu.memory_space<vmem>>, %arg2: memref<256x1024xbf16, #tpu.memory_space<vmem>>, %arg3: memref<1x1024xf32, #tpu.memory_space<vmem>>, %arg4: memref<1024x256xbf16, #tpu.memory_space<vmem>>, %arg5: memref<1x256xf32, #tpu.memory_space<vmem>>, %arg6: memref<8x256xf32, #tpu.memory_space<vmem>>) attributes {dimension_semantics = [#tpu.dimension_semantics<parallel>], iteration_bounds = array<i64: 1>, scalar_prefetch = 0 : i64, scratch_operands = 0 : i64, tpu.core_type = #tpu.core_type<tc>, window_params = [{transform_indices = @transform_0, window_bounds = array<i64: 8, 256>}, {pipeline_mode = #tpu.pipeline_mode<synchronous>, transform_indices = @transform_1, window_bounds = array<i64: 256, 1024>}, {pipeline_mode = #tpu.pipeline_mode<synchronous>, transform_indices = @transform_2, window_bounds = array<i64: 1, 1024>}, {pipeline_mode = #tpu.pipeline_mode<synchronous>, transform_indices = @transform_3, window_bounds = array<i64: 1024, 256>}, {pipeline_mode = #tpu.pipeline_mode<synchronous>, transform_indices = @transform_4, window_bounds = array<i64: 1, 256>}, {transform_indices = @transform_5, window_bounds = array<i64: 8, 256>}]} {
    %c0 = arith.constant 0 : index
    %c0_0 = arith.constant 0 : index
    %0 = vector.load %arg1[%c0, %c0_0] : memref<8x256xf32, #tpu.memory_space<vmem>>, vector<8x256xf32>
    %1 = arith.truncf %0 : vector<8x256xf32> to vector<8x256xbf16>
    %c0_1 = arith.constant 0 : index
    %c0_2 = arith.constant 0 : index
    %2 = vector.load %arg2[%c0_1, %c0_2] : memref<256x1024xbf16, #tpu.memory_space<vmem>>, vector<256x1024xbf16>
    %cst = arith.constant dense<0.000000e+00> : vector<8x1024xf32>
    %3 = tpu.matmul %1, %2, %cst {dimension_numbers = #tpu.dot_dimension_numbers<[1], [0], [0], [1], [0, 0, 1, 1], [], []>} : vector<8x256xbf16>, vector<256x1024xbf16>, vector<8x1024xf32> -> vector<8x1024xf32>
    %c0_3 = arith.constant 0 : index
    %c0_4 = arith.constant 0 : index
    %4 = vector.load %arg3[%c0_3, %c0_4] : memref<1x1024xf32, #tpu.memory_space<vmem>>, vector<1x1024xf32>
    %5 = vector.broadcast %4 : vector<1x1024xf32> to vector<8x1024xf32>
    %6 = arith.addf %3, %5 : vector<8x1024xf32>
    %cst_5 = arith.constant 0.000000e+00 : f32
    %7 = vector.broadcast %cst_5 : f32 to vector<8x1024xf32>
    %8 = arith.maximumf %6, %7 : vector<8x1024xf32>
    %9 = arith.truncf %8 : vector<8x1024xf32> to vector<8x1024xbf16>
    %c0_6 = arith.constant 0 : index
    %c0_7 = arith.constant 0 : index
    %10 = vector.load %arg4[%c0_6, %c0_7] : memref<1024x256xbf16, #tpu.memory_space<vmem>>, vector<1024x256xbf16>
    %cst_8 = arith.constant dense<0.000000e+00> : vector<8x256xf32>
    %11 = tpu.matmul %9, %10, %cst_8 {dimension_numbers = #tpu.dot_dimension_numbers<[1], [0], [0], [1], [0, 0, 1, 1], [], []>} : vector<8x1024xbf16>, vector<1024x256xbf16>, vector<8x256xf32> -> vector<8x256xf32>
    %c0_9 = arith.constant 0 : index
    %c0_10 = arith.constant 0 : index
    %12 = vector.load %arg5[%c0_9, %c0_10] : memref<1x256xf32, #tpu.memory_space<vmem>>, vector<1x256xf32>
    %13 = vector.broadcast %12 : vector<1x256xf32> to vector<8x256xf32>
    %14 = arith.addf %11, %13 : vector<8x256xf32>
    %15 = arith.addf %0, %14 : vector<8x256xf32>
    %c0_11 = arith.constant 0 : index
    %c0_12 = arith.constant 0 : index
    %16 = vector.load %arg6[%c0_11, %c0_12] : memref<8x256xf32, #tpu.memory_space<vmem>>, vector<8x256xf32>
    tpu.vector_store %arg6[%c0_11, %c0_12], %15 {strides = array<i32>} : memref<8x256xf32, #tpu.memory_space<vmem>>, vector<8x256xf32>,
    return
  }
  func.func @transform_0(%arg0: i32) -> (i32, i32) {
    %c0_i32 = arith.constant 0 : i32
    %c0_i32_0 = arith.constant 0 : i32
    return %arg0, %c0_i32 : i32, i32
  }
  func.func @transform_1(%arg0: i32) -> (i32, i32) {
    %c0_i32 = arith.constant 0 : i32
    %c0_i32_0 = arith.constant 0 : i32
    %c0_i32_1 = arith.constant 0 : i32
    return %c0_i32, %c0_i32_0 : i32, i32
  }
  func.func @transform_2(%arg0: i32) -> (i32, i32) {
    %c0_i32 = arith.constant 0 : i32
    %c0_i32_0 = arith.constant 0 : i32
    %c0_i32_1 = arith.constant 0 : i32
    return %c0_i32, %c0_i32_0 : i32, i32
  }
  func.func @transform_3(%arg0: i32) -> (i32, i32) {
    %c0_i32 = arith.constant 0 : i32
    %c0_i32_0 = arith.constant 0 : i32
    %c0_i32_1 = arith.constant 0 : i32
    return %c0_i32, %c0_i32_0 : i32, i32
  }
  func.func @transform_4(%arg0: i32) -> (i32, i32) {
    %c0_i32 = arith.constant 0 : i32
    %c0_i32_0 = arith.constant 0 : i32
    %c0_i32_1 = arith.constant 0 : i32
    return %c0_i32, %c0_i32_0 : i32, i32
  }
  func.func @transform_5(%arg0: i32) -> (i32, i32) {
    %c0_i32 = arith.constant 0 : i32
    %c0_i32_0 = arith.constant 0 : i32
    return %arg0, %c0_i32 : i32, i32
  }
}

</mosaic_0001>

<bundles_post_ra>
// kernel: tpu_custom_call.1
= control target key start
LH: loop header
LB: loop body
LE: loop exit
PB: predicated region body
PF: predicated region fallthrough
CT: control target
= control target key end

     0   :  { %10 = vsyncpa [#allocation3], 0  ;;  %s2750_s0 = inlined_call_operand.hbm [shape: f32[8,256], index: 0, kind: input, shape index: {}]   ;;  %s2751_s1 = inlined_call_operand.hbm [shape: bf16[256,1024], index: 1, kind: input, shape index: {}]   ;;  %s2752_s2 = inlined_call_operand.hbm [shape: f32[1,1024], index: 2, kind: input, shape index: {}]   ;;  %s2753_s3 = inlined_call_operand.hbm [shape: bf16[1024,256], index: 3, kind: input, shape index: {}]   ;;  %s2754_s4 = inlined_call_operand.vmem [shape: f32[1,256], index: 4, kind: input, shape index: {}]   ;;  %s2755_s5 = inlined_call_operand.hbm [shape: f32[8,256], index: 5, kind: output, shape index: {}]  }
   0x1   :  { %11 = vsyncpa [#allocation6], 0 }
   0x2   :  { %12 = vsyncpa [#allocation9], 0 }
   0x3   :  { %13 = vsyncpa [#allocation4], 0  ;;  %s2608_s18 = smov [#allocation5]   ;;  %s2490_s22 = scalar_lea.hbm %s2751_s1, 16384 }
   0x4   :  { %s29_s19 = sshll.u32 %s2608_s18, 4  ;;  %p2491_p0 = scmp.ne.s32.totalorder %s2751_s1, %s2490_s22  ;;  %s30_s19 = int_to_ptr.vmem [resolvable:$true] %s29_s19 }
   0x5   :  { %p2494_p1 = scmp.lt.u32.totalorder %s2490_s22, %s2751_s1 }
   0x7   :  { %p2496_p2 = pnand %p2494_p1, %p2491_p0 }
   0x9   :  { %2499 = shalt.err (!%p2496_p2)
}
   0xa   :  { %s2500_s27 = scalar_lea.vmem %s30_s19, 16384  ;;  %p2505_p4 = scmp.lt.s32.totalorder %s30_s19, %s30_s19 }
   0xb   :  { %p2501_p3 = scmp.ne.s32.totalorder %s30_s19, %s2500_s27  ;;  %p2506_p5 = scmp.lt.s32.totalorder %s2500_s27, %s2500_s27 }
   0xd   :  { %p2507_p6 = por %p2506_p5, %p2505_p4 }
   0xf   :  { %p2508_p7 = pnand %p2507_p6, %p2501_p3 }
  0x11   :  { %2511 = shalt.err (!%p2508_p7)
}
  0x12   :  { %s2609_s28 = smov 512   ;;  %s2610_s29 = smov 32  }
  0x13   :  { %35 = dma.hbm_to_vmem [thread:$0]  %s2751_s1, 16384, %s30_s19, [#allocation6], %s2609_s28, %s2609_s28, %s2610_s29  }
  0x14   :  { %s2611_s7 = smov [#allocation2]   ;;  %s2612_s9 = smov [#allocation7]  }
  0x15   :  { %s20_s8 = sshll.u32 %s2611_s7, 4  ;;  %s42_s10 = sshll.u32 %s2612_s9, 4  ;;  %s21_s8 = int_to_ptr.vmem [resolvable:$true] %s20_s8  ;;  %s43_s10 = int_to_ptr.vmem [resolvable:$true] %s42_s10 }
  0x16   :  { %s2512_s13 = scalar_lea.hbm %s2750_s0, 256 }
  0x17   :  { %p2513_p8 = scmp.ne.s32.totalorder %s2750_s0, %s2512_s13  ;;  %p2516_p9 = scmp.lt.u32.totalorder %s2512_s13, %s2750_s0 }
  0x19   :  { %p2518_p10 = pnand %p2516_p9, %p2513_p8 }
  0x1b   :  { %2521 = shalt.err (!%p2518_p10)
}
  0x1c   :  { %s2522_s1 = scalar_lea.vmem %s21_s8, 256  ;;  %p2527_p12 = scmp.lt.s32.totalorder %s21_s8, %s21_s8 }
  0x1d   :  { %p2523_p11 = scmp.ne.s32.totalorder %s21_s8, %s2522_s1  ;;  %p2528_p13 = scmp.lt.s32.totalorder %s2522_s1, %s2522_s1 }
  0x1f   :  { %p2529_p0 = por %p2528_p13, %p2527_p12 }
  0x21   :  { %p2530_p1 = pnand %p2529_p0, %p2523_p11 }
  0x23   :  { %2533 = shalt.err (!%p2530_p1)
}
  0x24   :  { %23 = dma.hbm_to_vmem [thread:$0]  %s2750_s0, 256, %s21_s8, [#allocation3]  }
  0x25   :  { %s2534_s22 = scalar_lea.hbm %s2752_s2, 128 }
  0x26   :  { %p2535_p2 = scmp.ne.s32.totalorder %s2752_s2, %s2534_s22  ;;  %p2538_p3 = scmp.lt.u32.totalorder %s2534_s22, %s2752_s2 }
  0x28   :  { %p2540_p4 = pnand %p2538_p3, %p2535_p2 }
  0x2a   :  { %2543 = shalt.err (!%p2540_p4)
}
  0x2b   :  { %s2544_s27 = scalar_lea.vmem %s43_s10, 128  ;;  %p2549_p6 = scmp.lt.s32.totalorder %s43_s10, %s43_s10 }
  0x2c   :  { %p2545_p5 = scmp.ne.s32.totalorder %s43_s10, %s2544_s27  ;;  %p2550_p7 = scmp.lt.s32.totalorder %s2544_s27, %s2544_s27 }
  0x2e   :  { %p2551_p8 = por %p2550_p7, %p2549_p6 }
  0x30   :  { %p2552_p9 = pnand %p2551_p8, %p2545_p5 }
  0x32   :  { %2555 = shalt.err (!%p2552_p9)
}
  0x33   :  { %45 = dma.hbm_to_vmem [thread:$0]  %s2752_s2, 128, %s43_s10, [#allocation6]  }
  0x34   :  { %s2613_s29 = smov [#allocation8]   ;;  %s2556_s8 = scalar_lea.hbm %s2753_s3, 16384 }
  0x35   :  { %s51_s30 = sshll.u32 %s2613_s29, 4  ;;  %p2557_p10 = scmp.ne.s32.totalorder %s2753_s3, %s2556_s8  ;;  %s52_s30 = int_to_ptr.vmem [resolvable:$true] %s51_s30 }
  0x36   :  { %p2560_p11 = scmp.lt.u32.totalorder %s2556_s8, %s2753_s3 }
  0x38   :  { %p2562_p12 = pnand %p2560_p11, %p2557_p10 }
  0x3a   :  { %2565 = shalt.err (!%p2562_p12)
}
  0x3b   :  { %s2566_s14 = scalar_lea.vmem %s52_s30, 16384  ;;  %p2571_p0 = scmp.lt.s32.totalorder %s52_s30, %s52_s30 }
  0x3c   :  { %p2567_p13 = scmp.ne.s32.totalorder %s52_s30, %s2566_s14  ;;  %p2572_p1 = scmp.lt.s32.totalorder %s2566_s14, %s2566_s14 }
  0x3e   :  { %p2573_p2 = por %p2572_p1, %p2571_p0 }
  0x40   :  { %p2574_p3 = pnand %p2573_p2, %p2567_p13 }
  0x42   :  { %2577 = shalt.err (!%p2574_p3)
}
  0x43   :  { %s2614_s2 = smov 128   ;;  %s2615_s10 = smov 8  }
  0x44   :  { %57 = dma.hbm_to_vmem [thread:$0]  %s2753_s3, 16384, %s52_s30, [#allocation9], %s2614_s2, %s2614_s2, %s2615_s10  }
  0x45   :  { %2600 = dma.done.wait [#allocation3], 256  }
  0x46   :  { %2601 = vsyncadd [#allocation3], 4294967040 }
  0x47   :  { %2602 = dma.done.wait [#allocation6], 16512  }
  0x48   :  { %2603 = vsyncadd [#allocation6], 4294950784 }
  0x49   :  { %2604 = dma.done.wait [#allocation9], 16384  }
  0x4a   :  { %2605 = vsyncadd [#allocation9], 4294950912  ;;  %v76_v0 = vld [vmem:[#allocation5] sm:$0xff]  ;;  %v77_v2 = vld [vmem:[#allocation5 + $0x8] sm:$0xff] }
  0x4b   :  { %v80_v1 = vld [vmem:[#allocation5 + $0x20] sm:$0xff]  ;;  %v81_v4 = vld [vmem:[#allocation5 + $0x28] sm:$0xff]  ;;  %v73_v53 = vld [vmem:[#allocation2 + $0x8] sm:$0xff] }
  0x4c   :  { %v2032_v3 = vcombine.high %v76_v0, %v80_v1  ;;  %v2031_v5 = vcombine.low %v76_v0, %v80_v1  ;;  %v84_v6 = vld [vmem:[#allocation5 + $0x40] sm:$0xff]  ;;  %v2034_v8 = vcombine.high %v77_v2, %v81_v4  ;;  %v2033_v9 = vcombine.low %v77_v2, %v81_v4  ;;  %v85_v11 = vld [vmem:[#allocation5 + $0x48] sm:$0xff] }
  0x4d   :  { %v88_v7 = vld [vmem:[#allocation5 + $0x60] sm:$0xff]  ;;  %v89_v12 = vld [vmem:[#allocation5 + $0x68] sm:$0xff]  ;;  %v2695_v57 = vpack.c.bf16 %v73_v53, %v73_v53 }
  0x4e   :  { %v2040_v10 = vcombine.high %v84_v6, %v88_v7  ;;  %v92_v13 = vld [vmem:[#allocation5 + $0x80] sm:$0xff]  ;;  %886 = vmatprep.subr.bf16.mxu0 %v2032_v3  ;;  %v2042_v14 = vcombine.high %v85_v11, %v89_v12  ;;  %v93_v16 = vld [vmem:[#allocation5 + $0x88] sm:$0xff]  ;;  %927 = vmatprep.subr.bf16.mxu1 %v2034_v8  ;;  %v2039_v18 = vcombine.low %v84_v6, %v88_v7 }
  0x4f   :  { %v96_v15 = vld [vmem:[#allocation5 + $0xa0] sm:$0xff]  ;;  %v97_v17 = vld [vmem:[#allocation5 + $0xa8] sm:$0xff]  ;;  %887 = vmatpush1.bf16.msra.mxu0 %v2031_v5  ;;  %928 = vmatpush1.bf16.msra.mxu1 %v2033_v9  ;;  %v2041_v19 = vcombine.low %v85_v11, %v89_v12 }
  0x50   :  { %888 = vmatprep.subr.bf16.mxu0 %v2040_v10  ;;  %v2048_v20 = vcombine.high %v92_v13, %v96_v15  ;;  %929 = vmatprep.subr.bf16.mxu1 %v2042_v14  ;;  %v2050_v21 = vcombine.high %v93_v16, %v97_v17  ;;  %v100_v22 = vld [vmem:[#allocation5 + $0xc0] sm:$0xff]  ;;  %v101_v24 = vld [vmem:[#allocation5 + $0xc8] sm:$0xff]  ;;  %v2047_v26 = vcombine.low %v92_v13, %v96_v15 }
  0x51   :  { %v104_v23 = vld [vmem:[#allocation5 + $0xe0] sm:$0xff]  ;;  %v105_v25 = vld [vmem:[#allocation5 + $0xe8] sm:$0xff]  ;;  %v2049_v27 = vcombine.low %v93_v16, %v97_v17  ;;  %918 = vmatprep.mubr.bf16.mxu0 %v2695_v57  ;;  %959 = vmatprep.mubr.bf16.mxu1 %v2695_v57 }
  0x52   :  { %v2056_v28 = vcombine.high %v100_v22, %v104_v23  ;;  %v2058_v29 = vcombine.high %v101_v24, %v105_v25  ;;  %v108_v30 = vld [vmem:[#allocation5 + $0x100] sm:$0xff]  ;;  %v109_v32 = vld [vmem:[#allocation5 + $0x108] sm:$0xff]  ;;  %v2055_v34 = vcombine.low %v100_v22, %v104_v23  ;;  %v2057_v35 = vcombine.low %v101_v24, %v105_v25 }
  0x53   :  { %889 = vmatpush1.bf16.msra.mxu0 %v2039_v18  ;;  %930 = vmatpush1.bf16.msra.mxu1 %v2041_v19  ;;  %v112_v31 = vld [vmem:[#allocation5 + $0x120] sm:$0xff]  ;;  %v113_v33 = vld [vmem:[#allocation5 + $0x128] sm:$0xff] }
  0x54   :  { %890 = vmatprep.subr.bf16.mxu0 %v2048_v20  ;;  %931 = vmatprep.subr.bf16.mxu1 %v2050_v21  ;;  %v2064_v36 = vcombine.high %v108_v30, %v112_v31  ;;  %v2066_v37 = vcombine.high %v109_v32, %v113_v33  ;;  %v116_v38 = vld [vmem:[#allocation5 + $0x140] sm:$0xff]  ;;  %v117_v40 = vld [vmem:[#allocation5 + $0x148] sm:$0xff]  ;;  %v2063_v42 = vcombine.low %v108_v30, %v112_v31 }
  0x55   :  { %v120_v39 = vld [vmem:[#allocation5 + $0x160] sm:$0xff]  ;;  %v121_v41 = vld [vmem:[#allocation5 + $0x168] sm:$0xff]  ;;  %v2065_v43 = vcombine.low %v109_v32, %v113_v33 }
  0x56   :  { %v2072_v44 = vcombine.high %v116_v38, %v120_v39  ;;  %v2074_v45 = vcombine.high %v117_v40, %v121_v41  ;;  %v124_v46 = vld [vmem:[#allocation5 + $0x180] sm:$0xff]  ;;  %v125_v48 = vld [vmem:[#allocation5 + $0x188] sm:$0xff]  ;;  %v2071_v50 = vcombine.low %v116_v38, %v120_v39  ;;  %v2073_v51 = vcombine.low %v117_v40, %v121_v41 }
  0x57   :  { %891 = vmatpush1.bf16.msra.mxu0 %v2047_v26  ;;  %932 = vmatpush1.bf16.msra.mxu1 %v2049_v27  ;;  %v128_v47 = vld [vmem:[#allocation5 + $0x1a0] sm:$0xff]  ;;  %v129_v49 = vld [vmem:[#allocation5 + $0x1a8] sm:$0xff] }
  0x58   :  { %892 = vmatprep.subr.bf16.mxu0 %v2056_v28  ;;  %933 = vmatprep.subr.bf16.mxu1 %v2058_v29  ;;  %v2080_v52 = vcombine.high %v124_v46, %v128_v47  ;;  %v2082_v54 = vcombine.high %v125_v48, %v129_v49  ;;  %v132_v55 = vld [vmem:[#allocation5 + $0x1c0] sm:$0xff]  ;;  %v133_v58 = vld [vmem:[#allocation5 + $0x1c8] sm:$0xff]  ;;  %v2079_v60 = vcombine.low %v124_v46, %v128_v47 }
  0x59   :  { %v136_v56 = vld [vmem:[#allocation5 + $0x1e0] sm:$0xff]  ;;  %v137_v59 = vld [vmem:[#allocation5 + $0x1e8] sm:$0xff]  ;;  %v2081_v61 = vcombine.low %v125_v48, %v129_v49 }
  0x5a   :  { %v2088_v62 = vcombine.high %v132_v55, %v136_v56  ;;  %v2090_v63 = vcombine.high %v133_v58, %v137_v59  ;;  %v140_v0 = vld [vmem:[#allocation5 + $0x200] sm:$0xff]  ;;  %v141_v2 = vld [vmem:[#allocation5 + $0x208] sm:$0xff]  ;;  %v2087_v4 = vcombine.low %v132_v55, %v136_v56  ;;  %v2089_v5 = vcombine.low %v133_v58, %v137_v59 }
  0x5b   :  { %893 = vmatpush1.bf16.msra.mxu0 %v2055_v34  ;;  %934 = vmatpush1.bf16.msra.mxu1 %v2057_v35  ;;  %v144_v1 = vld [vmem:[#allocation5 + $0x220] sm:$0xff]  ;;  %v145_v3 = vld [vmem:[#allocation5 + $0x228] sm:$0xff] }
  0x5c   :  { %894 = vmatprep.subr.bf16.mxu0 %v2064_v36  ;;  %935 = vmatprep.subr.bf16.mxu1 %v2066_v37  ;;  %v2096_v6 = vcombine.high %v140_v0, %v144_v1  ;;  %v2098_v7 = vcombine.high %v141_v2, %v145_v3  ;;  %v148_v8 = vld [vmem:[#allocation5 + $0x240] sm:$0xff]  ;;  %v149_v10 = vld [vmem:[#allocation5 + $0x248] sm:$0xff]  ;;  %v2095_v12 = vcombine.low %v140_v0, %v144_v1  ;;  %v78_v0 = vld [vmem:[#allocation5 + $0x10] sm:$0xff] }
  0x5d   :  { %v152_v9 = vld [vmem:[#allocation5 + $0x260] sm:$0xff]  ;;  %v153_v11 = vld [vmem:[#allocation5 + $0x268] sm:$0xff]  ;;  %v2097_v13 = vcombine.low %v141_v2, %v145_v3  ;;  %v82_v1 = vld [vmem:[#allocation5 + $0x30] sm:$0xff] }
  0x5e   :  { %v2104_v14 = vcombine.high %v148_v8, %v152_v9  ;;  %v2106_v15 = vcombine.high %v149_v10, %v153_v11  ;;  %v156_v16 = vld [vmem:[#allocation5 + $0x280] sm:$0xff]  ;;  %v157_v18 = vld [vmem:[#allocation5 + $0x288] sm:$0xff]  ;;  %v2103_v20 = vcombine.low %v148_v8, %v152_v9  ;;  %v2105_v21 = vcombine.low %v149_v10, %v153_v11  ;;  %v79_v3 = vld [vmem:[#allocation5 + $0x18] sm:$0xff] }
  0x5f   :  { %895 = vmatpush1.bf16.msra.mxu0 %v2063_v42  ;;  %936 = vmatpush1.bf16.msra.mxu1 %v2065_v43  ;;  %v160_v17 = vld [vmem:[#allocation5 + $0x2a0] sm:$0xff]  ;;  %v161_v19 = vld [vmem:[#allocation5 + $0x2a8] sm:$0xff]  ;;  %v2036_v8 = vcombine.high %v78_v0, %v82_v1  ;;  %v86_v9 = vld [vmem:[#allocation5 + $0x50] sm:$0xff] }
  0x60   :  { %896 = vmatprep.subr.bf16.mxu0 %v2072_v44  ;;  %937 = vmatprep.subr.bf16.mxu1 %v2074_v45  ;;  %v2112_v22 = vcombine.high %v156_v16, %v160_v17  ;;  %v2114_v23 = vcombine.high %v157_v18, %v161_v19  ;;  %v164_v24 = vld [vmem:[#allocation5 + $0x2c0] sm:$0xff]  ;;  %v165_v26 = vld [vmem:[#allocation5 + $0x2c8] sm:$0xff]  ;;  %v2111_v28 = vcombine.low %v156_v16, %v160_v17  ;;  %v90_v10 = vld [vmem:[#allocation5 + $0x70] sm:$0xff] }
  0x61   :  { %v168_v25 = vld [vmem:[#allocation5 + $0x2e0] sm:$0xff]  ;;  %v169_v27 = vld [vmem:[#allocation5 + $0x2e8] sm:$0xff]  ;;  %v2113_v29 = vcombine.low %v157_v18, %v161_v19  ;;  %v2044_v17 = vcombine.high %v86_v9, %v90_v10  ;;  %v94_v18 = vld [vmem:[#allocation5 + $0x90] sm:$0xff] }
  0x62   :  { %v2120_v30 = vcombine.high %v164_v24, %v168_v25  ;;  %v2122_v31 = vcombine.high %v165_v26, %v169_v27  ;;  %v172_v32 = vld [vmem:[#allocation5 + $0x300] sm:$0xff]  ;;  %v173_v34 = vld [vmem:[#allocation5 + $0x308] sm:$0xff]  ;;  %v2119_v36 = vcombine.low %v164_v24, %v168_v25  ;;  %v2121_v37 = vcombine.low %v165_v26, %v169_v27  ;;  %v98_v19 = vld [vmem:[#allocation5 + $0xb0] sm:$0xff] }
  0x63   :  { %897 = vmatpush1.bf16.msra.mxu0 %v2071_v50  ;;  %938 = vmatpush1.bf16.msra.mxu1 %v2073_v51  ;;  %v176_v33 = vld [vmem:[#allocation5 + $0x320] sm:$0xff]  ;;  %v177_v35 = vld [vmem:[#allocation5 + $0x328] sm:$0xff]  ;;  %v2052_v25 = vcombine.high %v94_v18, %v98_v19  ;;  %v102_v26 = vld [vmem:[#allocation5 + $0xd0] sm:$0xff] }
  0x64   :  { %898 = vmatprep.subr.bf16.mxu0 %v2080_v52  ;;  %939 = vmatprep.subr.bf16.mxu1 %v2082_v54  ;;  %v2128_v38 = vcombine.high %v172_v32, %v176_v33  ;;  %v180_v39 = vld [vmem:[#allocation5 + $0x340] sm:$0xff]  ;;  %v2130_v41 = vcombine.high %v173_v34, %v177_v35  ;;  %v181_v42 = vld [vmem:[#allocation5 + $0x348] sm:$0xff]  ;;  %v2127_v44 = vcombine.low %v172_v32, %v176_v33  ;;  %v106_v27 = vld [vmem:[#allocation5 + $0xf0] sm:$0xff] }
  0x65   :  { %v184_v40 = vld [vmem:[#allocation5 + $0x360] sm:$0xff]  ;;  %v185_v43 = vld [vmem:[#allocation5 + $0x368] sm:$0xff]  ;;  %v2129_v45 = vcombine.low %v173_v34, %v177_v35  ;;  %v2060_v33 = vcombine.high %v102_v26, %v106_v27  ;;  %v110_v34 = vld [vmem:[#allocation5 + $0x110] sm:$0xff] }
  0x66   :  { %v2136_v46 = vcombine.high %v180_v39, %v184_v40  ;;  %v188_v47 = vld [vmem:[#allocation5 + $0x380] sm:$0xff]  ;;  %v2138_v49 = vcombine.high %v181_v42, %v185_v43  ;;  %v189_v50 = vld [vmem:[#allocation5 + $0x388] sm:$0xff]  ;;  %v2135_v52 = vcombine.low %v180_v39, %v184_v40  ;;  %v2137_v53 = vcombine.low %v181_v42, %v185_v43  ;;  %v114_v35 = vld [vmem:[#allocation5 + $0x130] sm:$0xff] }
  0x67   :  { %899 = vmatpush1.bf16.msra.mxu0 %v2079_v60  ;;  %940 = vmatpush1.bf16.msra.mxu1 %v2081_v61  ;;  %v192_v48 = vld [vmem:[#allocation5 + $0x3a0] sm:$0xff]  ;;  %v193_v51 = vld [vmem:[#allocation5 + $0x3a8] sm:$0xff]  ;;  %v2059_v39 = vcombine.low %v102_v26, %v106_v27  ;;  %v118_v42 = vld [vmem:[#allocation5 + $0x150] sm:$0xff] }
  0x68   :  { %900 = vmatprep.subr.bf16.mxu0 %v2088_v62  ;;  %941 = vmatprep.subr.bf16.mxu1 %v2090_v63  ;;  %v2144_v54 = vcombine.high %v188_v47, %v192_v48  ;;  %v196_v55 = vld [vmem:[#allocation5 + $0x3c0] sm:$0xff]  ;;  %v2146_v58 = vcombine.high %v189_v50, %v193_v51  ;;  %v197_v59 = vld [vmem:[#allocation5 + $0x3c8] sm:$0xff]  ;;  %v2143_v61 = vcombine.low %v188_v47, %v192_v48  ;;  %v126_v47 = vld [vmem:[#allocation5 + $0x190] sm:$0xff] }
  0x69   :  { %v200_v56 = vld [vmem:[#allocation5 + $0x3e0] sm:$0xff]  ;;  %v201_v60 = vld [vmem:[#allocation5 + $0x3e8] sm:$0xff]  ;;  %v2145_v62 = vcombine.low %v189_v50, %v193_v51  ;;  %v130_v48 = vld [vmem:[#allocation5 + $0x1b0] sm:$0xff] }
  0x6a   :  { %v2152_v63 = vcombine.high %v196_v55, %v200_v56  ;;  %v2154_v2 = vcombine.high %v197_v59, %v201_v60  ;;  %v127_v51 = vld [vmem:[#allocation5 + $0x198] sm:$0xff]  ;;  %v170_v26 = vld [vmem:[#allocation5 + $0x2f0] sm:$0xff] }
  0x6b   :  { %901 = vmatpush1.bf16.msra.mxu0 %v2087_v4  ;;  %942 = vmatpush1.bf16.msra.mxu1 %v2089_v5  ;;  %v83_v4 = vld [vmem:[#allocation5 + $0x38] sm:$0xff]  ;;  %v2151_v5 = vcombine.low %v196_v55, %v200_v56  ;;  %v134_v55 = vld [vmem:[#allocation5 + $0x1d0] sm:$0xff] }
  0x6c   :  { %902 = vmatprep.subr.bf16.mxu0 %v2096_v6  ;;  %943 = vmatprep.subr.bf16.mxu1 %v2098_v7  ;;  %v72_v6 = vld [vmem:[#allocation2] sm:$0xff]  ;;  %v2153_v7 = vcombine.low %v197_v59, %v201_v60  ;;  %v2038_v11 = vcombine.high %v79_v3, %v83_v4  ;;  %v2037_v16 = vcombine.low %v79_v3, %v83_v4  ;;  %v135_v60 = vld [vmem:[#allocation5 + $0x1d8] sm:$0xff] }
  0x6d   :  { %v138_v56 = vld [vmem:[#allocation5 + $0x1f0] sm:$0xff]  ;;  %v2084_v59 = vcombine.high %v126_v47, %v130_v48  ;;  %v143_v4 = vld [vmem:[#allocation5 + $0x218] sm:$0xff] }
  0x6e   :  { %v2092_v3 = vcombine.high %v134_v55, %v138_v56 }
  0x6f   :  { %903 = vmatpush1.bf16.msra.mxu0 %v2095_v12  ;;  %944 = vmatpush1.bf16.msra.mxu1 %v2097_v13  ;;  %v87_v12 = vld [vmem:[#allocation5 + $0x58] sm:$0xff]  ;;  %v2699_v13 = vpack.c.bf16 %v72_v6, %v72_v6 }
  0x70   :  { %904 = vmatprep.subr.bf16.mxu0 %v2104_v14  ;;  %945 = vmatprep.subr.bf16.mxu1 %v2106_v15  ;;  %v91_v14 = vld [vmem:[#allocation5 + $0x78] sm:$0xff]  ;;  %v2035_v15 = vcombine.low %v78_v0, %v82_v1  ;;  %v142_v0 = vld [vmem:[#allocation5 + $0x210] sm:$0xff] }
  0x71   :  { %v2045_v24 = vcombine.low %v87_v12, %v91_v14  ;;  %v146_v1 = vld [vmem:[#allocation5 + $0x230] sm:$0xff] }
  0x73   :  { %905 = vmatpush1.bf16.msra.mxu0 %v2103_v20  ;;  %946 = vmatpush1.bf16.msra.mxu1 %v2105_v21  ;;  %v2046_v20 = vcombine.high %v87_v12, %v91_v14  ;;  %v95_v21 = vld [vmem:[#allocation5 + $0x98] sm:$0xff] }
  0x74   :  { %906 = vmatprep.subr.bf16.mxu0 %v2112_v22  ;;  %947 = vmatprep.subr.bf16.mxu1 %v2114_v23  ;;  %v99_v22 = vld [vmem:[#allocation5 + $0xb8] sm:$0xff]  ;;  %v2043_v23 = vcombine.low %v86_v9, %v90_v10  ;;  %v154_v9 = vld [vmem:[#allocation5 + $0x270] sm:$0xff] }
  0x75   :  { %v2053_v32 = vcombine.low %v95_v21, %v99_v22  ;;  %v151_v12 = vld [vmem:[#allocation5 + $0x258] sm:$0xff] }
  0x76   :  { %v155_v14 = vld [vmem:[#allocation5 + $0x278] sm:$0xff] }
  0x77   :  { %907 = vmatpush1.bf16.msra.mxu0 %v2111_v28  ;;  %948 = vmatpush1.bf16.msra.mxu1 %v2113_v29  ;;  %v2054_v28 = vcombine.high %v95_v21, %v99_v22  ;;  %v103_v29 = vld [vmem:[#allocation5 + $0xd8] sm:$0xff]  ;;  %v2109_v27 = vcombine.low %v151_v12, %v155_v14 }
  0x78   :  { %908 = vmatprep.subr.bf16.mxu0 %v2120_v30  ;;  %949 = vmatprep.subr.bf16.mxu1 %v2122_v31  ;;  %v107_v30 = vld [vmem:[#allocation5 + $0xf8] sm:$0xff]  ;;  %v2051_v31 = vcombine.low %v94_v18, %v98_v19  ;;  %v162_v18 = vld [vmem:[#allocation5 + $0x2b0] sm:$0xff] }
  0x79   :  { %v2061_v40 = vcombine.low %v103_v29, %v107_v30  ;;  %v159_v21 = vld [vmem:[#allocation5 + $0x298] sm:$0xff] }
  0x7a   :  { %v163_v22 = vld [vmem:[#allocation5 + $0x2b8] sm:$0xff] }
  0x7b   :  { %909 = vmatpush1.bf16.msra.mxu0 %v2119_v36  ;;  %950 = vmatpush1.bf16.msra.mxu1 %v2121_v37  ;;  %v2062_v36 = vcombine.high %v103_v29, %v107_v30  ;;  %v111_v37 = vld [vmem:[#allocation5 + $0x118] sm:$0xff] }
  0x7c   :  { %910 = vmatprep.subr.bf16.mxu0 %v2128_v38  ;;  %951 = vmatprep.subr.bf16.mxu1 %v2130_v41  ;;  %v115_v38 = vld [vmem:[#allocation5 + $0x138] sm:$0xff]  ;;  %v2068_v41 = vcombine.high %v110_v34, %v114_v35 }
  0x7d   :  { %v2070_v43 = vcombine.high %v111_v37, %v115_v38  ;;  %v167_v29 = vld [vmem:[#allocation5 + $0x2d8] sm:$0xff] }
  0x7e   :  { %v171_v30 = vld [vmem:[#allocation5 + $0x2f8] sm:$0xff] }
  0x7f   :  { %911 = vmatpush1.bf16.msra.mxu0 %v2127_v44  ;;  %952 = vmatpush1.bf16.msra.mxu1 %v2129_v45  ;;  %v119_v44 = vld [vmem:[#allocation5 + $0x158] sm:$0xff] }
  0x80   :  { %912 = vmatprep.subr.bf16.mxu0 %v2136_v46  ;;  %953 = vmatprep.subr.bf16.mxu1 %v2138_v49  ;;  %v123_v45 = vld [vmem:[#allocation5 + $0x178] sm:$0xff]  ;;  %v2067_v46 = vcombine.low %v110_v34, %v114_v35  ;;  %v2069_v49 = vcombine.low %v111_v37, %v115_v38  ;;  %v2126_v35 = vcombine.high %v167_v29, %v171_v30  ;;  %v178_v37 = vld [vmem:[#allocation5 + $0x330] sm:$0xff] }
  0x81   :  { %v175_v38 = vld [vmem:[#allocation5 + $0x318] sm:$0xff] }
  0x83   :  { %913 = vmatpush1.bf16.msra.mxu0 %v2135_v52  ;;  %954 = vmatpush1.bf16.msra.mxu1 %v2137_v53  ;;  %v131_v52 = vld [vmem:[#allocation5 + $0x1b8] sm:$0xff]  ;;  %v2078_v53 = vcombine.high %v119_v44, %v123_v45 }
  0x84   :  { %914 = vmatprep.subr.bf16.mxu0 %v2144_v54  ;;  %955 = vmatprep.subr.bf16.mxu1 %v2146_v58  ;;  %v2077_v58 = vcombine.low %v119_v44, %v123_v45  ;;  %v186_v44 = vld [vmem:[#allocation5 + $0x370] sm:$0xff]  ;;  %v183_v45 = vld [vmem:[#allocation5 + $0x358] sm:$0xff] }
  0x87   :  { %915 = vmatpush1.bf16.msra.mxu0 %v2143_v61  ;;  %956 = vmatpush1.bf16.msra.mxu1 %v2145_v62  ;;  %v139_v61 = vld [vmem:[#allocation5 + $0x1f8] sm:$0xff]  ;;  %v2086_v62 = vcombine.high %v127_v51, %v131_v52 }
  0x88   :  { %916 = vmatprep.subr.bf16.mxu0 %v2152_v63  ;;  %957 = vmatprep.subr.bf16.mxu1 %v2154_v2  ;;  %v2083_v63 = vcombine.low %v126_v47, %v130_v48  ;;  %v2085_v2 = vcombine.low %v127_v51, %v131_v52  ;;  %v2094_v6 = vcombine.high %v135_v60, %v139_v61  ;;  %v190_v51 = vld [vmem:[#allocation5 + $0x390] sm:$0xff] }
  0x89   :  { %v2093_v10 = vcombine.low %v135_v60, %v139_v61  ;;  %v194_v52 = vld [vmem:[#allocation5 + $0x3b0] sm:$0xff] }
  0x8a   :  { %v198_v60 = vld [vmem:[#allocation5 + $0x3d0] sm:$0xff] }
  0x8b   :  { %917 = vmatpush1.bf16.msra.mxu0 %v2151_v5  ;;  %958 = vmatpush1.bf16.msra.mxu1 %v2153_v7  ;;  %v147_v5 = vld [vmem:[#allocation5 + $0x238] sm:$0xff]  ;;  %v2091_v7 = vcombine.low %v134_v55, %v138_v56  ;;  %v202_v61 = vld [vmem:[#allocation5 + $0x3f0] sm:$0xff] }
  0x8c   :  { %968 = vmatprep.subr.bf16.mxu0 %v2036_v8  ;;  %1009 = vmatprep.subr.bf16.mxu1 %v2038_v11  ;;  %v150_v8 = vld [vmem:[#allocation5 + $0x250] sm:$0xff]  ;;  %v2100_v11 = vcombine.high %v142_v0, %v146_v1  ;;  %v2101_v19 = vcombine.low %v143_v4, %v147_v5 }
  0x8e   :  { %919 = vmatmul.mubr.bf16.vlgmr.msra.gmra.mrb[0].mxu0 %v2699_v13  ;;  %960 = vmatmul.mubr.bf16.vlgmr.msra.gmra.mrb[0].mxu1 %v2699_v13 }
  0x8f   :  { %969 = vmatpush1.bf16.msra.mxu0 %v2035_v15  ;;  %1010 = vmatpush1.bf16.msra.mxu1 %v2037_v16  ;;  %v2102_v15 = vcombine.high %v143_v4, %v147_v5  ;;  %v2099_v16 = vcombine.low %v142_v0, %v146_v1  ;;  %v2147_v0 = vcombine.low %v190_v51, %v194_v52 }
  0x90   :  { %970 = vmatprep.subr.bf16.mxu0 %v2044_v17  ;;  %1011 = vmatprep.subr.bf16.mxu1 %v2046_v20  ;;  %v158_v17 = vld [vmem:[#allocation5 + $0x290] sm:$0xff]  ;;  %v2108_v20 = vcombine.high %v150_v8, %v154_v9  ;;  %v2155_v4 = vcombine.low %v198_v60, %v202_v61 }
  0x91   :  { %1000 = vmatprep.mubr.bf16.mxu0 %v2695_v57  ;;  %1041 = vmatprep.mubr.bf16.mxu1 %v2695_v57  ;;  %v122_v57 = vld [vmem:[#allocation5 + $0x170] sm:$0xff] }
  0x92   :  { %v2076_v50 = vcombine.high %v118_v42, %v122_v57  ;;  %v2075_v54 = vcombine.low %v118_v42, %v122_v57 }
  0x93   :  { %971 = vmatpush1.bf16.msra.mxu0 %v2043_v23  ;;  %1012 = vmatpush1.bf16.msra.mxu1 %v2045_v24  ;;  %v2110_v23 = vcombine.high %v151_v12, %v155_v14  ;;  %v2107_v24 = vcombine.low %v150_v8, %v154_v9  ;;  %v2296_v8 = vld [vmem:[#allocation8] ss:$8 sps:$4 sm:$0xff]   ;;  %v2302_v12 = vld [vmem:[#allocation8 + $0x10] ss:$8 sps:$4 sm:$0xff]  }
  0x94   :  { %972 = vmatprep.subr.bf16.mxu0 %v2052_v25  ;;  %1013 = vmatprep.subr.bf16.mxu1 %v2054_v28  ;;  %v166_v25 = vld [vmem:[#allocation5 + $0x2d0] sm:$0xff]  ;;  %v2116_v28 = vcombine.high %v158_v17, %v162_v18  ;;  %v2305_v14 = vld [vmem:[#allocation8 + $0x110] ss:$8 sps:$4 sm:$0xff]  }
  0x95   :  { %v2124_v34 = vcombine.high %v166_v25, %v170_v26  ;;  %v2299_v9 = vld [vmem:[#allocation8 + $0x100] ss:$8 sps:$4 sm:$0xff]  }
  0x97   :  { %973 = vmatpush1.bf16.msra.mxu0 %v2051_v31  ;;  %1014 = vmatpush1.bf16.msra.mxu1 %v2053_v32  ;;  %v2118_v31 = vcombine.high %v159_v21, %v163_v22  ;;  %v2115_v32 = vcombine.low %v158_v17, %v162_v18  ;;  %v2308_v17 = vld [vmem:[#allocation8 + $0x20] ss:$8 sps:$4 sm:$0xff]  }
  0x98   :  { %974 = vmatprep.subr.bf16.mxu0 %v2060_v33  ;;  %1015 = vmatprep.subr.bf16.mxu1 %v2062_v36  ;;  %v2117_v33 = vcombine.low %v159_v21, %v163_v22  ;;  %v174_v36 = vld [vmem:[#allocation5 + $0x310] sm:$0xff]  ;;  %v2314_v21 = vld [vmem:[#allocation8 + $0x30] ss:$8 sps:$4 sm:$0xff]  }
  0x99   :  { %v2132_v42 = vcombine.high %v174_v36, %v178_v37  ;;  %v2131_v47 = vcombine.low %v174_v36, %v178_v37  ;;  %v2311_v18 = vld [vmem:[#allocation8 + $0x120] ss:$8 sps:$4 sm:$0xff]   ;;  %v2322_v22 = vld [vmem:[#allocation8 + $0x44] ss:$8 sps:$4 sm:$0xff]   ;;  %v2338_v36 = vld [vmem:[#allocation8 + $0x70] ss:$8 sps:$4 sm:$0xff]  }
  0x9a   :  { %v2341_v37 = vld [vmem:[#allocation8 + $0x170] ss:$8 sps:$4 sm:$0xff]  }
  0x9b   :  { %975 = vmatpush1.bf16.msra.mxu0 %v2059_v39  ;;  %1016 = vmatpush1.bf16.msra.mxu1 %v2061_v40  ;;  %v179_v39 = vld [vmem:[#allocation5 + $0x338] sm:$0xff]  ;;  %v2123_v40 = vcombine.low %v166_v25, %v170_v26  ;;  %v2323_v25 = vld [vmem:[#allocation8 + $0x140] ss:$8 sps:$4 sm:$0xff]  }
  0x9c   :  { %976 = vmatprep.subr.bf16.mxu0 %v2068_v41  ;;  %1017 = vmatprep.subr.bf16.mxu1 %v2070_v43  ;;  %v2125_v41 = vcombine.low %v167_v29, %v171_v30  ;;  %v2134_v57 = vcombine.high %v175_v38, %v179_v39  ;;  %v182_v43 = vld [vmem:[#allocation5 + $0x350] sm:$0xff]  ;;  %v2133_v48 = vcombine.low %v175_v38, %v179_v39  ;;  %v2328_v26 = vld [vmem:[#allocation8 + $0x54] ss:$8 sps:$4 sm:$0xff]   ;;  %v2329_v29 = vld [vmem:[#allocation8 + $0x150] ss:$8 sps:$4 sm:$0xff]  }
  0x9d   :  { %v2139_v55 = vcombine.low %v182_v43, %v186_v44  ;;  %v2334_v30 = vld [vmem:[#allocation8 + $0x64] ss:$8 sps:$4 sm:$0xff]  }
  0x9e   :  { %v2346_v38 = vld [vmem:[#allocation8 + $0x84] ss:$8 sps:$4 sm:$0xff]  }
  0x9f   :  { %977 = vmatpush1.bf16.msra.mxu0 %v2067_v46  ;;  %1018 = vmatpush1.bf16.msra.mxu1 %v2069_v49  ;;  %v187_v46 = vld [vmem:[#allocation5 + $0x378] sm:$0xff]  ;;  %v2140_v49 = vcombine.high %v182_v43, %v186_v44  ;;  %v2349_v39 = vld [vmem:[#allocation8 + $0x184] ss:$8 sps:$4 sm:$0xff]  }
  0xa0   :  { %978 = vmatprep.subr.bf16.mxu0 %v2076_v50  ;;  %1019 = vmatprep.subr.bf16.mxu1 %v2078_v53  ;;  %v2142_v50 = vcombine.high %v183_v45, %v187_v46  ;;  %v191_v53 = vld [vmem:[#allocation5 + $0x398] sm:$0xff]  ;;  %v2141_v56 = vcombine.low %v183_v45, %v187_v46  ;;  %v2358_v45 = vld [vmem:[#allocation8 + $0xa4] ss:$8 sps:$4 sm:$0xff]  }
  0xa1   :  { %v2350_v43 = vld [vmem:[#allocation8 + $0x90] ss:$8 sps:$4 sm:$0xff]   ;;  %v2361_v46 = vld [vmem:[#allocation8 + $0x1a4] ss:$8 sps:$4 sm:$0xff]  }
  0xa2   :  { %v2353_v44 = vld [vmem:[#allocation8 + $0x190] ss:$8 sps:$4 sm:$0xff]  }
  0xa3   :  { %979 = vmatpush1.bf16.msra.mxu0 %v2075_v54  ;;  %1020 = vmatpush1.bf16.msra.mxu1 %v2077_v58  ;;  %v195_v54 = vld [vmem:[#allocation5 + $0x3b8] sm:$0xff]  ;;  %v2148_v58 = vcombine.high %v190_v51, %v194_v52 }
  0xa4   :  { %980 = vmatprep.subr.bf16.mxu0 %v2084_v59  ;;  %1021 = vmatprep.subr.bf16.mxu1 %v2086_v62  ;;  %v2150_v59 = vcombine.high %v191_v53, %v195_v54  ;;  %v199_v62 = vld [vmem:[#allocation5 + $0x3d8] sm:$0xff]  ;;  %v2149_v1 = vcombine.low %v191_v53, %v195_v54  ;;  %v2370_v53 = vld [vmem:[#allocation8 + $0xc4] ss:$8 sps:$4 sm:$0xff]  }
  0xa5   :  { %v2362_v51 = vld [vmem:[#allocation8 + $0xb0] ss:$8 sps:$4 sm:$0xff]   ;;  %v2373_v54 = vld [vmem:[#allocation8 + $0x1c4] ss:$8 sps:$4 sm:$0xff]  }
  0xa6   :  { %v2365_v52 = vld [vmem:[#allocation8 + $0x1b0] ss:$8 sps:$4 sm:$0xff]  }
  0xa7   :  { %981 = vmatpush1.bf16.msra.mxu0 %v2083_v63  ;;  %1022 = vmatpush1.bf16.msra.mxu1 %v2085_v2  ;;  %v203_v63 = vld [vmem:[#allocation5 + $0x3f8] sm:$0xff]  ;;  %v2156_v2 = vcombine.high %v198_v60, %v202_v61 }
  0xa8   :  { %982 = vmatprep.subr.bf16.mxu0 %v2092_v3  ;;  %1023 = vmatprep.subr.bf16.mxu1 %v2094_v6  ;;  %v2158_v3 = vcombine.high %v199_v62, %v203_v63  ;;  %v2157_v5 = vcombine.low %v199_v62, %v203_v63  ;;  %v2298_v6 = vld [vmem:[#allocation8 + $0x4] ss:$8 sps:$4 sm:$0xff]   ;;  %v2374_v60 = vld [vmem:[#allocation8 + $0xd0] ss:$8 sps:$4 sm:$0xff]  }
  0xa9   :  { %v2377_v61 = vld [vmem:[#allocation8 + $0x1d0] ss:$8 sps:$4 sm:$0xff]   ;;  %v2382_v62 = vld [vmem:[#allocation8 + $0xe4] ss:$8 sps:$4 sm:$0xff]  }
  0xaa   :  { %v2385_v63 = vld [vmem:[#allocation8 + $0x1e4] ss:$8 sps:$4 sm:$0xff]  }
  0xab   :  { %983 = vmatpush1.bf16.msra.mxu0 %v2091_v7  ;;  %1024 = vmatpush1.bf16.msra.mxu1 %v2093_v10  ;;  %v2301_v7 = vld [vmem:[#allocation8 + $0x104] ss:$8 sps:$4 sm:$0xff]   ;;  %v2304_v10 = vld [vmem:[#allocation8 + $0x14] ss:$8 sps:$4 sm:$0xff]  }
  0xac   :  { %984 = vmatprep.subr.bf16.mxu0 %v2100_v11  ;;  %1025 = vmatprep.subr.bf16.mxu1 %v2102_v15  ;;  %v2307_v11 = vld [vmem:[#allocation8 + $0x114] ss:$8 sps:$4 sm:$0xff]   ;;  %v2310_v15 = vld [vmem:[#allocation8 + $0x24] ss:$8 sps:$4 sm:$0xff]  }
  0xaf   :  { %985 = vmatpush1.bf16.msra.mxu0 %v2099_v16  ;;  %1026 = vmatpush1.bf16.msra.mxu1 %v2101_v19  ;;  %v2313_v16 = vld [vmem:[#allocation8 + $0x124] ss:$8 sps:$4 sm:$0xff]   ;;  %v2316_v19 = vld [vmem:[#allocation8 + $0x34] ss:$8 sps:$4 sm:$0xff]  }
  0xb0   :  { %986 = vmatprep.subr.bf16.mxu0 %v2108_v20  ;;  %1027 = vmatprep.subr.bf16.mxu1 %v2110_v23  ;;  %v2319_v20 = vld [vmem:[#allocation8 + $0x134] ss:$8 sps:$4 sm:$0xff]   ;;  %v2325_v23 = vld [vmem:[#allocation8 + $0x144] ss:$8 sps:$4 sm:$0xff]  }
  0xb3   :  { %987 = vmatpush1.bf16.msra.mxu0 %v2107_v24  ;;  %1028 = vmatpush1.bf16.msra.mxu1 %v2109_v27  ;;  %v2320_v24 = vld [vmem:[#allocation8 + $0x40] ss:$8 sps:$4 sm:$0xff]   ;;  %v2331_v27 = vld [vmem:[#allocation8 + $0x154] ss:$8 sps:$4 sm:$0xff]  }
  0xb4   :  { %988 = vmatprep.subr.bf16.mxu0 %v2116_v28  ;;  %1029 = vmatprep.subr.bf16.mxu1 %v2118_v31  ;;  %v2326_v28 = vld [vmem:[#allocation8 + $0x50] ss:$8 sps:$4 sm:$0xff]   ;;  %v2337_v31 = vld [vmem:[#allocation8 + $0x164] ss:$8 sps:$4 sm:$0xff]  }
  0xb7   :  { %989 = vmatpush1.bf16.msra.mxu0 %v2115_v32  ;;  %1030 = vmatpush1.bf16.msra.mxu1 %v2117_v33  ;;  %v2332_v32 = vld [vmem:[#allocation8 + $0x60] ss:$8 sps:$4 sm:$0xff]  }
  0xb8   :  { %990 = vmatprep.subr.bf16.mxu0 %v2124_v34  ;;  %1031 = vmatprep.subr.bf16.mxu1 %v2126_v35  ;;  %v2335_v33 = vld [vmem:[#allocation8 + $0x160] ss:$8 sps:$4 sm:$0xff]   ;;  %v2340_v34 = vld [vmem:[#allocation8 + $0x74] ss:$8 sps:$4 sm:$0xff]  }
  0xb9   :  { %v2343_v35 = vld [vmem:[#allocation8 + $0x174] ss:$8 sps:$4 sm:$0xff]  }
  0xbb   :  { %991 = vmatpush1.bf16.msra.mxu0 %v2123_v40  ;;  %1032 = vmatpush1.bf16.msra.mxu1 %v2125_v41  ;;  %v2344_v40 = vld [vmem:[#allocation8 + $0x80] ss:$8 sps:$4 sm:$0xff]  }
  0xbc   :  { %992 = vmatprep.subr.bf16.mxu0 %v2132_v42  ;;  %1033 = vmatprep.subr.bf16.mxu1 %v2134_v57  ;;  %v2347_v41 = vld [vmem:[#allocation8 + $0x180] ss:$8 sps:$4 sm:$0xff]   ;;  %v2352_v42 = vld [vmem:[#allocation8 + $0x94] ss:$8 sps:$4 sm:$0xff]  }
  0xbd   :  { %v2355_v57 = vld [vmem:[#allocation8 + $0x194] ss:$8 sps:$4 sm:$0xff]  }
  0xbf   :  { %993 = vmatpush1.bf16.msra.mxu0 %v2131_v47  ;;  %1034 = vmatpush1.bf16.msra.mxu1 %v2133_v48  ;;  %v2356_v47 = vld [vmem:[#allocation8 + $0xa0] ss:$8 sps:$4 sm:$0xff]  }
  0xc0   :  { %994 = vmatprep.subr.bf16.mxu0 %v2140_v49  ;;  %1035 = vmatprep.subr.bf16.mxu1 %v2142_v50  ;;  %v2359_v48 = vld [vmem:[#allocation8 + $0x1a0] ss:$8 sps:$4 sm:$0xff]   ;;  %v2364_v49 = vld [vmem:[#allocation8 + $0xb4] ss:$8 sps:$4 sm:$0xff]  }
  0xc1   :  { %v2367_v50 = vld [vmem:[#allocation8 + $0x1b4] ss:$8 sps:$4 sm:$0xff]  }
  0xc3   :  { %995 = vmatpush1.bf16.msra.mxu0 %v2139_v55  ;;  %1036 = vmatpush1.bf16.msra.mxu1 %v2141_v56  ;;  %v2368_v55 = vld [vmem:[#allocation8 + $0xc0] ss:$8 sps:$4 sm:$0xff]  }
  0xc4   :  { %996 = vmatprep.subr.bf16.mxu0 %v2148_v58  ;;  %1037 = vmatprep.subr.bf16.mxu1 %v2150_v59  ;;  %v2371_v56 = vld [vmem:[#allocation8 + $0x1c0] ss:$8 sps:$4 sm:$0xff]   ;;  %v2376_v58 = vld [vmem:[#allocation8 + $0xd4] ss:$8 sps:$4 sm:$0xff]  }
  0xc5   :  { %v2379_v59 = vld [vmem:[#allocation8 + $0x1d4] ss:$8 sps:$4 sm:$0xff]  }
  0xc7   :  { %997 = vmatpush1.bf16.msra.mxu0 %v2147_v0  ;;  %1038 = vmatpush1.bf16.msra.mxu1 %v2149_v1  ;;  %v2380_v0 = vld [vmem:[#allocation8 + $0xe0] ss:$8 sps:$4 sm:$0xff]  }
  0xc8   :  { %998 = vmatprep.subr.bf16.mxu0 %v2156_v2  ;;  %1039 = vmatprep.subr.bf16.mxu1 %v2158_v3  ;;  %v2383_v1 = vld [vmem:[#allocation8 + $0x1e0] ss:$8 sps:$4 sm:$0xff]   ;;  %v2388_v2 = vld [vmem:[#allocation8 + $0xf4] ss:$8 sps:$4 sm:$0xff]  }
  0xc9   :  { %v2391_v3 = vld [vmem:[#allocation8 + $0x1f4] ss:$8 sps:$4 sm:$0xff]  }
  0xcb   :  { %999 = vmatpush1.bf16.msra.mxu0 %v2155_v4  ;;  %1040 = vmatpush1.bf16.msra.mxu1 %v2157_v5  ;;  %v2386_v4 = vld [vmem:[#allocation8 + $0xf0] ss:$8 sps:$4 sm:$0xff]  }
  0xcc   :  { %1846 = vmatprep.subr.bf16.mxu0 %v2298_v6  ;;  %1887 = vmatprep.subr.bf16.mxu1 %v2301_v7  ;;  %v2389_v5 = vld [vmem:[#allocation8 + $0x1f0] ss:$8 sps:$4 sm:$0xff]   ;;  %v2394_v6 = vld [vmem:[#allocation8 + $0x204] ss:$8 sps:$4 sm:$0xff]  }
  0xcd   :  { %v2397_v7 = vld [vmem:[#allocation8 + $0x304] ss:$8 sps:$4 sm:$0xff]  }
  0xce   :  { %1001 = vmatmul.mubr.bf16.vlgmr.msra.gmra.mrb[4].mxu0 %v2699_v13  ;;  %1042 = vmatmul.mubr.bf16.vlgmr.msra.gmra.mrb[4].mxu1 %v2699_v13  ;;  %v2317_v13 = vld [vmem:[#allocation8 + $0x130] ss:$8 sps:$4 sm:$0xff]  }
  0xcf   :  { %1847 = vmatpush1.bf16.msra.mxu0 %v2296_v8  ;;  %1888 = vmatpush1.bf16.msra.mxu1 %v2299_v9  ;;  %v206_v8 = vlaneseq }
  0xd0   :  { %1848 = vmatprep.subr.bf16.mxu0 %v2304_v10  ;;  %1889 = vmatprep.subr.bf16.mxu1 %v2307_v11  ;;  %v2710_v11 = vld [vmem:[#allocation7] sm:$0xff] }
  0xd1   :  { %v2707_v9 = vshrl.u32 %v206_v8, 7  ;;  %v2443_v8 = vld [vmem:[#allocation8 + $0x380] ss:$8 sps:$4 sm:$0xff]  }
  0xd3   :  { %1849 = vmatpush1.bf16.msra.mxu0 %v2302_v12  ;;  %1890 = vmatpush1.bf16.msra.mxu1 %v2305_v14  ;;  %v208_v10 = vsub.s32 0, %v2707_v9  ;;  %v216_v12 = vsub.s32 2, %v2707_v9  ;;  %v212_v14 = vsub.s32 1, %v2707_v9 }
  0xd4   :  { %1850 = vmatprep.subr.bf16.mxu0 %v2310_v15  ;;  %1891 = vmatprep.subr.bf16.mxu1 %v2313_v16  ;;  %v220_v15 = vsub.s32 3, %v2707_v9 }
  0xd5   :  { %v209_v16 = vrot.slane %v2710_v11, %v208_v10 }
  0xd7   :  { %1851 = vmatpush1.bf16.msra.mxu0 %v2308_v17  ;;  %1892 = vmatpush1.bf16.msra.mxu1 %v2311_v18  ;;  %v217_v17 = vrot.slane %v2710_v11, %v216_v12  ;;  %v213_v18 = vrot.slane %v2710_v11, %v212_v14  ;;  %v2448_v12 = vld [vmem:[#allocation8 + $0x294] ss:$8 sps:$4 sm:$0xff]  }
  0xd8   :  { %1852 = vmatprep.subr.bf16.mxu0 %v2316_v19  ;;  %1893 = vmatprep.subr.bf16.mxu1 %v2319_v20  ;;  %v221_v19 = vrot.slane %v2710_v11, %v220_v15  ;;  %v2451_v15 = vld [vmem:[#allocation8 + $0x394] ss:$8 sps:$4 sm:$0xff]  }
  0xdb   :  { %1853 = vmatpush1.bf16.msra.mxu0 %v2314_v21  ;;  %1894 = vmatpush1.bf16.msra.mxu1 %v2317_v13 }
  0xdc   :  { %1854 = vmatprep.subr.bf16.mxu0 %v2322_v22  ;;  %1895 = vmatprep.subr.bf16.mxu1 %v2325_v23 }
  0xdf   :  { %1855 = vmatpush1.bf16.msra.mxu0 %v2320_v24  ;;  %1896 = vmatpush1.bf16.msra.mxu1 %v2323_v25 }
  0xe0   :  { %1856 = vmatprep.subr.bf16.mxu0 %v2328_v26  ;;  %1897 = vmatprep.subr.bf16.mxu1 %v2331_v27 }
  0xe3   :  { %1857 = vmatpush1.bf16.msra.mxu0 %v2326_v28  ;;  %1898 = vmatpush1.bf16.msra.mxu1 %v2329_v29 }
  0xe4   :  { %1858 = vmatprep.subr.bf16.mxu0 %v2334_v30  ;;  %1899 = vmatprep.subr.bf16.mxu1 %v2337_v31 }
  0xe7   :  { %1859 = vmatpush1.bf16.msra.mxu0 %v2332_v32  ;;  %1900 = vmatpush1.bf16.msra.mxu1 %v2335_v33 }
  0xe8   :  { %1860 = vmatprep.subr.bf16.mxu0 %v2340_v34  ;;  %1901 = vmatprep.subr.bf16.mxu1 %v2343_v35 }
  0xeb   :  { %1861 = vmatpush1.bf16.msra.mxu0 %v2338_v36  ;;  %1902 = vmatpush1.bf16.msra.mxu1 %v2341_v37 }
  0xec   :  { %1862 = vmatprep.subr.bf16.mxu0 %v2346_v38  ;;  %1903 = vmatprep.subr.bf16.mxu1 %v2349_v39  ;;  %v2392_v38 = vld [vmem:[#allocation8 + $0x200] ss:$8 sps:$4 sm:$0xff]  }
  0xef   :  { %1863 = vmatpush1.bf16.msra.mxu0 %v2344_v40  ;;  %1904 = vmatpush1.bf16.msra.mxu1 %v2347_v41  ;;  %v2395_v40 = vld [vmem:[#allocation8 + $0x300] ss:$8 sps:$4 sm:$0xff]   ;;  %v2400_v41 = vld [vmem:[#allocation8 + $0x214] ss:$8 sps:$4 sm:$0xff]  }
  0xf0   :  { %1864 = vmatprep.subr.bf16.mxu0 %v2352_v42  ;;  %1905 = vmatprep.subr.bf16.mxu1 %v2355_v57  ;;  %v2403_v42 = vld [vmem:[#allocation8 + $0x314] ss:$8 sps:$4 sm:$0xff]   ;;  %v2398_v57 = vld [vmem:[#allocation8 + $0x210] ss:$8 sps:$4 sm:$0xff]  }
  0xf3   :  { %1865 = vmatpush1.bf16.msra.mxu0 %v2350_v43  ;;  %1906 = vmatpush1.bf16.msra.mxu1 %v2353_v44  ;;  %v2401_v43 = vld [vmem:[#allocation8 + $0x310] ss:$8 sps:$4 sm:$0xff]   ;;  %v2406_v44 = vld [vmem:[#allocation8 + $0x224] ss:$8 sps:$4 sm:$0xff]  }
  0xf4   :  { %1866 = vmatprep.subr.bf16.mxu0 %v2358_v45  ;;  %1907 = vmatprep.subr.bf16.mxu1 %v2361_v46  ;;  %v2409_v45 = vld [vmem:[#allocation8 + $0x324] ss:$8 sps:$4 sm:$0xff]   ;;  %v2404_v46 = vld [vmem:[#allocation8 + $0x220] ss:$8 sps:$4 sm:$0xff]  }
  0xf7   :  { %1867 = vmatpush1.bf16.msra.mxu0 %v2356_v47  ;;  %1908 = vmatpush1.bf16.msra.mxu1 %v2359_v48  ;;  %v2407_v47 = vld [vmem:[#allocation8 + $0x320] ss:$8 sps:$4 sm:$0xff]   ;;  %v2412_v48 = vld [vmem:[#allocation8 + $0x234] ss:$8 sps:$4 sm:$0xff]  }
  0xf8   :  { %1868 = vmatprep.subr.bf16.mxu0 %v2364_v49  ;;  %1909 = vmatprep.subr.bf16.mxu1 %v2367_v50  ;;  %v2415_v49 = vld [vmem:[#allocation8 + $0x334] ss:$8 sps:$4 sm:$0xff]   ;;  %v2410_v50 = vld [vmem:[#allocation8 + $0x230] ss:$8 sps:$4 sm:$0xff]  }
  0xfb   :  { %1869 = vmatpush1.bf16.msra.mxu0 %v2362_v51  ;;  %1910 = vmatpush1.bf16.msra.mxu1 %v2365_v52  ;;  %v2413_v51 = vld [vmem:[#allocation8 + $0x330] ss:$8 sps:$4 sm:$0xff]   ;;  %v2418_v52 = vld [vmem:[#allocation8 + $0x244] ss:$8 sps:$4 sm:$0xff]  }
  0xfc   :  { %1870 = vmatprep.subr.bf16.mxu0 %v2370_v53  ;;  %1911 = vmatprep.subr.bf16.mxu1 %v2373_v54  ;;  %v2421_v53 = vld [vmem:[#allocation8 + $0x344] ss:$8 sps:$4 sm:$0xff]   ;;  %v2416_v54 = vld [vmem:[#allocation8 + $0x240] ss:$8 sps:$4 sm:$0xff]  }
  0xff   :  { %1871 = vmatpush1.bf16.msra.mxu0 %v2368_v55  ;;  %1912 = vmatpush1.bf16.msra.mxu1 %v2371_v56  ;;  %v2419_v55 = vld [vmem:[#allocation8 + $0x340] ss:$8 sps:$4 sm:$0xff]   ;;  %v2424_v56 = vld [vmem:[#allocation8 + $0x254] ss:$8 sps:$4 sm:$0xff]  }
 0x100   :  { %1872 = vmatprep.subr.bf16.mxu0 %v2376_v58  ;;  %1913 = vmatprep.subr.bf16.mxu1 %v2379_v59  ;;  %v2427_v58 = vld [vmem:[#allocation8 + $0x354] ss:$8 sps:$4 sm:$0xff]   ;;  %v2422_v59 = vld [vmem:[#allocation8 + $0x250] ss:$8 sps:$4 sm:$0xff]  }
 0x103   :  { %1873 = vmatpush1.bf16.msra.mxu0 %v2374_v60  ;;  %1914 = vmatpush1.bf16.msra.mxu1 %v2377_v61  ;;  %v2425_v60 = vld [vmem:[#allocation8 + $0x350] ss:$8 sps:$4 sm:$0xff]   ;;  %v2430_v61 = vld [vmem:[#allocation8 + $0x264] ss:$8 sps:$4 sm:$0xff]  }
 0x104   :  { %1874 = vmatprep.subr.bf16.mxu0 %v2382_v62  ;;  %1915 = vmatprep.subr.bf16.mxu1 %v2385_v63  ;;  %v2433_v62 = vld [vmem:[#allocation8 + $0x364] ss:$8 sps:$4 sm:$0xff]   ;;  %v2428_v63 = vld [vmem:[#allocation8 + $0x260] ss:$8 sps:$4 sm:$0xff]  }
 0x107   :  { %1875 = vmatpush1.bf16.msra.mxu0 %v2380_v0  ;;  %1916 = vmatpush1.bf16.msra.mxu1 %v2383_v1  ;;  %v2431_v0 = vld [vmem:[#allocation8 + $0x360] ss:$8 sps:$4 sm:$0xff]   ;;  %v2436_v1 = vld [vmem:[#allocation8 + $0x274] ss:$8 sps:$4 sm:$0xff]  }
 0x108   :  { %1876 = vmatprep.subr.bf16.mxu0 %v2388_v2  ;;  %1917 = vmatprep.subr.bf16.mxu1 %v2391_v3  ;;  %v2439_v2 = vld [vmem:[#allocation8 + $0x374] ss:$8 sps:$4 sm:$0xff]   ;;  %v2434_v3 = vld [vmem:[#allocation8 + $0x270] ss:$8 sps:$4 sm:$0xff]  }
 0x10b   :  { %1877 = vmatpush1.bf16.msra.mxu0 %v2386_v4  ;;  %1918 = vmatpush1.bf16.msra.mxu1 %v2389_v5  ;;  %v2437_v4 = vld [vmem:[#allocation8 + $0x370] ss:$8 sps:$4 sm:$0xff]   ;;  %v2442_v5 = vld [vmem:[#allocation8 + $0x284] ss:$8 sps:$4 sm:$0xff]  }
 0x10c   :  { %1928 = vmatprep.subr.bf16.mxu0 %v2394_v6  ;;  %1969 = vmatprep.subr.bf16.mxu1 %v2397_v7  ;;  %v2445_v6 = vld [vmem:[#allocation8 + $0x384] ss:$8 sps:$4 sm:$0xff]   ;;  %v2440_v7 = vld [vmem:[#allocation8 + $0x280] ss:$8 sps:$4 sm:$0xff]  }
 0x161   :  { %v920_v20 = vpop.f32.mrb[0].mxu0  ;;  %v961_v13 = vpop.f32.mrb[0].mxu1 }
 0x162   :  { %v921_v21 = vadd.f32 %v920_v20, %v209_v16  ;;  %v922_v22 = vpop.f32.mrb[1].mxu0  ;;  %v962_v23 = vadd.f32 %v961_v13, %v217_v17  ;;  %v963_v25 = vpop.f32.mrb[1].mxu1  ;;  %v2446_v16 = vld [vmem:[#allocation8 + $0x290] ss:$8 sps:$4 sm:$0xff]   ;;  %v2452_v20 = vld [vmem:[#allocation8 + $0x2a0] ss:$8 sps:$4 sm:$0xff]  }
 0x163   :  { %v923_v24 = vadd.f32 %v922_v22, %v213_v18  ;;  %v924_v26 = vpop.f32.mrb[2].mxu0  ;;  %v964_v28 = vadd.f32 %v963_v25, %v221_v19  ;;  %v965_v29 = vpop.f32.mrb[2].mxu1  ;;  %v2449_v17 = vld [vmem:[#allocation8 + $0x390] ss:$8 sps:$4 sm:$0xff]   ;;  %v2454_v18 = vld [vmem:[#allocation8 + $0x2a4] ss:$8 sps:$4 sm:$0xff]  }
 0x164   :  { %v1050_v27 = vmax.f32 %v921_v21, 0.0  ;;  %v925_v30 = vpop.f32.mrb[3].mxu0  ;;  %v1052_v31 = vmax.f32 %v962_v23, 0.0  ;;  %v966_v33 = vpop.f32.mrb[3].mxu1  ;;  %v2457_v19 = vld [vmem:[#allocation8 + $0x3a4] ss:$8 sps:$4 sm:$0xff]  }
 0x165   :  { %v1051_v32 = vmax.f32 %v923_v24, 0.0  ;;  %v1053_v35 = vmax.f32 %v964_v28, 0.0  ;;  %v2455_v21 = vld [vmem:[#allocation8 + $0x3a0] ss:$8 sps:$4 sm:$0xff]   ;;  %v2460_v13 = vld [vmem:[#allocation8 + $0x2b4] ss:$8 sps:$4 sm:$0xff]  }
 0x166   :  { %v1058_v34 = vpack.c.bf16 %v1050_v27, %v1050_v27  ;;  %v1060_v36 = vpack.c.bf16 %v1052_v31, %v1052_v31  ;;  %v2463_v22 = vld [vmem:[#allocation8 + $0x3b4] ss:$8 sps:$4 sm:$0xff]   ;;  %v2458_v23 = vld [vmem:[#allocation8 + $0x2b0] ss:$8 sps:$4 sm:$0xff]   ;;  %v2466_v25 = vld [vmem:[#allocation8 + $0x2c4] ss:$8 sps:$4 sm:$0xff]  }
 0x167   :  { %v1059_v37 = vpack.c.bf16 %v1051_v32, %v1051_v32  ;;  %v1061_v39 = vpack.c.bf16 %v1053_v35, %v1053_v35  ;;  %v2461_v24 = vld [vmem:[#allocation8 + $0x3b0] ss:$8 sps:$4 sm:$0xff]   ;;  %v2469_v26 = vld [vmem:[#allocation8 + $0x3c4] ss:$8 sps:$4 sm:$0xff]   ;;  %v2464_v27 = vld [vmem:[#allocation8 + $0x2c0] ss:$8 sps:$4 sm:$0xff]  }
 0x168   :  { %v2467_v28 = vld [vmem:[#allocation8 + $0x3c0] ss:$8 sps:$4 sm:$0xff]   ;;  %v2472_v29 = vld [vmem:[#allocation8 + $0x2d4] ss:$8 sps:$4 sm:$0xff]   ;;  %v224_v31 = vsub.s32 4, %v2707_v9  ;;  %v232_v33 = vsub.s32 6, %v2707_v9 }
 0x169   :  { %1878 = vmatprep.mubr.bf16.mxu0 %v1059_v37  ;;  %1919 = vmatprep.mubr.bf16.mxu1 %v1061_v39  ;;  %v2475_v30 = vld [vmem:[#allocation8 + $0x3d4] ss:$8 sps:$4 sm:$0xff]   ;;  %v2470_v32 = vld [vmem:[#allocation8 + $0x2d0] ss:$8 sps:$4 sm:$0xff]   ;;  %v2478_v37 = vld [vmem:[#allocation8 + $0x2e4] ss:$8 sps:$4 sm:$0xff]  }
 0x16a   :  { %1879 = vmatmul.mubr.bf16.vlgmr.msra.gmra.mrb[8].mxu0 %v1058_v34  ;;  %1920 = vmatmul.mubr.bf16.vlgmr.msra.gmra.mrb[8].mxu1 %v1060_v36  ;;  %v228_v34 = vsub.s32 5, %v2707_v9  ;;  %v2473_v35 = vld [vmem:[#allocation8 + $0x3d0] ss:$8 sps:$4 sm:$0xff]   ;;  %v236_v36 = vsub.s32 7, %v2707_v9  ;;  %v225_v39 = vrot.slane %v2710_v11, %v224_v31 }
 0x16b   :  { %1929 = vmatpush1.bf16.msra.mxu0 %v2392_v38  ;;  %1970 = vmatpush1.bf16.msra.mxu1 %v2395_v40  ;;  %v2481_v38 = vld [vmem:[#allocation8 + $0x3e4] ss:$8 sps:$4 sm:$0xff]   ;;  %v233_v40 = vrot.slane %v2710_v11, %v232_v33 }
 0x16c   :  { %1930 = vmatprep.subr.bf16.mxu0 %v2400_v41  ;;  %1971 = vmatprep.subr.bf16.mxu1 %v2403_v42  ;;  %v229_v41 = vrot.slane %v2710_v11, %v228_v34  ;;  %v2476_v42 = vld [vmem:[#allocation8 + $0x2e0] ss:$8 sps:$4 sm:$0xff]   ;;  %v2489_v34 = vld [vmem:[#allocation2 + $0x8] sm:$0xff] }
 0x16f   :  { %1931 = vmatpush1.bf16.msra.mxu0 %v2398_v57  ;;  %1972 = vmatpush1.bf16.msra.mxu1 %v2401_v43  ;;  %v237_v57 = vrot.slane %v2710_v11, %v236_v36  ;;  %v2479_v43 = vld [vmem:[#allocation8 + $0x3e0] ss:$8 sps:$4 sm:$0xff]  }
 0x170   :  { %1932 = vmatprep.subr.bf16.mxu0 %v2406_v44  ;;  %1973 = vmatprep.subr.bf16.mxu1 %v2409_v45  ;;  %v2484_v44 = vld [vmem:[#allocation8 + $0x2f4] ss:$8 sps:$4 sm:$0xff]  }
 0x173   :  { %1933 = vmatpush1.bf16.msra.mxu0 %v2404_v46  ;;  %1974 = vmatpush1.bf16.msra.mxu1 %v2407_v47  ;;  %v2487_v46 = vld [vmem:[#allocation8 + $0x3f4] ss:$8 sps:$4 sm:$0xff]  }
 0x174   :  { %1934 = vmatprep.subr.bf16.mxu0 %v2412_v48  ;;  %1975 = vmatprep.subr.bf16.mxu1 %v2415_v49 }
 0x177   :  { %1935 = vmatpush1.bf16.msra.mxu0 %v2410_v50  ;;  %1976 = vmatpush1.bf16.msra.mxu1 %v2413_v51 }
 0x178   :  { %1936 = vmatprep.subr.bf16.mxu0 %v2418_v52  ;;  %1977 = vmatprep.subr.bf16.mxu1 %v2421_v53 }
 0x17b   :  { %1937 = vmatpush1.bf16.msra.mxu0 %v2416_v54  ;;  %1978 = vmatpush1.bf16.msra.mxu1 %v2419_v55  ;;  %v2482_v54 = vld [vmem:[#allocation8 + $0x2f0] ss:$8 sps:$4 sm:$0xff]  }
 0x17c   :  { %1938 = vmatprep.subr.bf16.mxu0 %v2424_v56  ;;  %1979 = vmatprep.subr.bf16.mxu1 %v2427_v58 }
 0x17f   :  { %1939 = vmatpush1.bf16.msra.mxu0 %v2422_v59  ;;  %1980 = vmatpush1.bf16.msra.mxu1 %v2425_v60  ;;  %v2485_v59 = vld [vmem:[#allocation8 + $0x3f0] ss:$8 sps:$4 sm:$0xff]  }
 0x180   :  { %1940 = vmatprep.subr.bf16.mxu0 %v2430_v61  ;;  %1981 = vmatprep.subr.bf16.mxu1 %v2433_v62 }
 0x183   :  { %1941 = vmatpush1.bf16.msra.mxu0 %v2428_v63  ;;  %1982 = vmatpush1.bf16.msra.mxu1 %v2431_v0 }
 0x184   :  { %1942 = vmatprep.subr.bf16.mxu0 %v2436_v1  ;;  %1983 = vmatprep.subr.bf16.mxu1 %v2439_v2 }
 0x187   :  { %1943 = vmatpush1.bf16.msra.mxu0 %v2434_v3  ;;  %1984 = vmatpush1.bf16.msra.mxu1 %v2437_v4  ;;  %v1194_v4 = vld [vmem:[%s2754_s4] sm:$0x3]  ;;  %s2616_s4 = smov [#allocation10]  }
 0x188   :  { %1944 = vmatprep.subr.bf16.mxu0 %v2442_v5  ;;  %1985 = vmatprep.subr.bf16.mxu1 %v2445_v6  ;;  %v1199_v5 = vrot.slane %v1194_v4, %v208_v10  ;;  %v1203_v6 = vrot.slane %v1194_v4, %v212_v14  ;;  %s2020_s1 = sshll.u32 %s2616_s4, 4  ;;  %s2021_s1 = int_to_ptr.vmem [resolvable:$true] %s2020_s1 }
 0x189   :  { %s2578_s18 = scalar_lea.vmem %s2021_s1, 256  ;;  %p2583_p5 = scmp.lt.s32.totalorder %s2021_s1, %s2021_s1 }
 0x18a   :  { %p2579_p4 = scmp.ne.s32.totalorder %s2021_s1, %s2578_s18  ;;  %p2584_p6 = scmp.lt.s32.totalorder %s2578_s18, %s2578_s18 }
 0x18b   :  { %1945 = vmatpush1.bf16.msra.mxu0 %v2440_v7  ;;  %1986 = vmatpush1.bf16.msra.mxu1 %v2443_v8 }
 0x18c   :  { %1946 = vmatprep.subr.bf16.mxu0 %v2448_v12  ;;  %1987 = vmatprep.subr.bf16.mxu1 %v2451_v15  ;;  %p2585_p7 = por %p2584_p6, %p2583_p5 }
 0x18e   :  { %p2586_p8 = pnand %p2585_p7, %p2579_p4 }
 0x18f   :  { %1947 = vmatpush1.bf16.msra.mxu0 %v2446_v16  ;;  %1988 = vmatpush1.bf16.msra.mxu1 %v2449_v17 }
 0x190   :  { %1948 = vmatprep.subr.bf16.mxu0 %v2454_v18  ;;  %1989 = vmatprep.subr.bf16.mxu1 %v2457_v19 }
 0x193   :  { %1949 = vmatpush1.bf16.msra.mxu0 %v2452_v20  ;;  %1990 = vmatpush1.bf16.msra.mxu1 %v2455_v21 }
 0x194   :  { %1950 = vmatprep.subr.bf16.mxu0 %v2460_v13  ;;  %1991 = vmatprep.subr.bf16.mxu1 %v2463_v22 }
 0x197   :  { %1951 = vmatpush1.bf16.msra.mxu0 %v2458_v23  ;;  %1992 = vmatpush1.bf16.msra.mxu1 %v2461_v24 }
 0x198   :  { %1952 = vmatprep.subr.bf16.mxu0 %v2466_v25  ;;  %1993 = vmatprep.subr.bf16.mxu1 %v2469_v26 }
 0x19b   :  { %1953 = vmatpush1.bf16.msra.mxu0 %v2464_v27  ;;  %1994 = vmatpush1.bf16.msra.mxu1 %v2467_v28 }
 0x19c   :  { %1954 = vmatprep.subr.bf16.mxu0 %v2472_v29  ;;  %1995 = vmatprep.subr.bf16.mxu1 %v2475_v30 }
 0x19f   :  { %1955 = vmatpush1.bf16.msra.mxu0 %v2470_v32  ;;  %1996 = vmatpush1.bf16.msra.mxu1 %v2473_v35  ;;  %v2488_v32 = vld [vmem:[#allocation2] sm:$0xff] }
 0x1a0   :  { %1956 = vmatprep.subr.bf16.mxu0 %v2478_v37  ;;  %1997 = vmatprep.subr.bf16.mxu1 %v2481_v38 }
 0x1a1   :  { %v1002_v45 = vpop.f32.mrb[4].mxu0  ;;  %v1043_v48 = vpop.f32.mrb[4].mxu1 }
 0x1a2   :  { %v1003_v47 = vadd.f32 %v1002_v45, %v225_v39  ;;  %v1004_v49 = vpop.f32.mrb[5].mxu0  ;;  %v1044_v50 = vadd.f32 %v1043_v48, %v233_v40  ;;  %v1045_v52 = vpop.f32.mrb[5].mxu1 }
 0x1a3   :  { %v1005_v51 = vadd.f32 %v1004_v49, %v229_v41  ;;  %v1006_v53 = vpop.f32.mrb[6].mxu0  ;;  %1957 = vmatpush1.bf16.msra.mxu0 %v2476_v42  ;;  %v1046_v56 = vadd.f32 %v1045_v52, %v237_v57  ;;  %v1047_v58 = vpop.f32.mrb[6].mxu1  ;;  %1998 = vmatpush1.bf16.msra.mxu1 %v2479_v43 }
 0x1a4   :  { %v1054_v55 = vmax.f32 %v1003_v47, 0.0  ;;  %v1007_v11 = vpop.f32.mrb[7].mxu0  ;;  %1958 = vmatprep.subr.bf16.mxu0 %v2484_v44  ;;  %v1056_v60 = vmax.f32 %v1044_v50, 0.0  ;;  %v1048_v62 = vpop.f32.mrb[7].mxu1  ;;  %1999 = vmatprep.subr.bf16.mxu1 %v2487_v46 }
 0x1a5   :  { %v1055_v61 = vmax.f32 %v1005_v51, 0.0  ;;  %v1057_v63 = vmax.f32 %v1046_v56, 0.0 }
 0x1a6   :  { %v1064_v0 = vpack.c.bf16 %v1056_v60, %v1056_v60  ;;  %v1062_v2 = vpack.c.bf16 %v1054_v55, %v1054_v55 }
 0x1a7   :  { %v1063_v1 = vpack.c.bf16 %v1055_v61, %v1055_v61  ;;  %1959 = vmatpush1.bf16.msra.mxu0 %v2482_v54  ;;  %v1065_v3 = vpack.c.bf16 %v1057_v63, %v1057_v63  ;;  %2000 = vmatpush1.bf16.msra.mxu1 %v2485_v59 }
 0x1a9   :  { %1960 = vmatprep.mubr.bf16.mxu0 %v1063_v1  ;;  %2001 = vmatprep.mubr.bf16.mxu1 %v1065_v3 }
 0x1aa   :  { %1961 = vmatmul.mubr.bf16.vlgmr.msra.gmra.mrb[12].mxu0 %v1062_v2  ;;  %2002 = vmatmul.mubr.bf16.vlgmr.msra.gmra.mrb[12].mxu1 %v1064_v0 }
 0x23d   :  { %v1880_v7 = vpop.f32.mrb[8].mxu0  ;;  %v1921_v12 = vpop.f32.mrb[8].mxu1 }
 0x23e   :  { %v1881_v8 = vadd.f32 %v1880_v7, %v1199_v5  ;;  %v1882_v15 = vpop.f32.mrb[9].mxu0  ;;  %v1923_v17 = vpop.f32.mrb[9].mxu1 }
 0x23f   :  { %v1883_v16 = vadd.f32 %v1882_v15, %v1203_v6  ;;  %v1884_v18 = vpop.f32.mrb[10].mxu0  ;;  %v1925_v20 = vpop.f32.mrb[10].mxu1 }
 0x240   :  { %v1922_v19 = vadd.f32 %v1921_v12, %v1881_v8  ;;  %v1885_v21 = vpop.f32.mrb[11].mxu0  ;;  %v1926_v22 = vpop.f32.mrb[11].mxu1 }
 0x241   :  { %v1924_v13 = vadd.f32 %v1923_v17, %v1883_v16 }
 0x27d   :  { %v1962_v23 = vpop.f32.mrb[12].mxu0  ;;  %v2003_v25 = vpop.f32.mrb[12].mxu1 }
 0x27e   :  { %v1963_v24 = vadd.f32 %v1962_v23, %v1922_v19  ;;  %v1964_v26 = vpop.f32.mrb[13].mxu0  ;;  %v2005_v27 = vpop.f32.mrb[13].mxu1 }
 0x27f   :  { %v1965_v10 = vadd.f32 %v1964_v26, %v1924_v13  ;;  %v1966_v9 = vpop.f32.mrb[14].mxu0  ;;  %v2007_v28 = vpop.f32.mrb[14].mxu1 }
 0x280   :  { %v2004_v14 = vadd.f32 %v2003_v25, %v1963_v24  ;;  %v1967_v29 = vpop.f32.mrb[15].mxu0  ;;  %v2008_v31 = vpop.f32.mrb[15].mxu1 }
 0x281   :  { %v2006_v30 = vadd.f32 %v2005_v27, %v1965_v10 }
 0x282   :  { %v2010_v33 = vadd.f32 %v2488_v32, %v2004_v14 }
 0x283   :  { %v2011_v35 = vadd.f32 %v2489_v34, %v2006_v30 }
 0x284   :  { %2012 = vst [vmem:[#allocation10] sm:$0xff] %v2010_v33 }
 0x285   :  { %2013 = vst [vmem:[#allocation10 + $0x8] sm:$0xff] %v2011_v35 }
 0x286   :  { %2589 = shalt.err (!%p2586_p8)
}
 0x287   :  { %s2590_s21 = scalar_lea.hbm %s2755_s5, 256 }
 0x288   :  { %p2591_p9 = scmp.ne.s32.totalorder %s2755_s5, %s2590_s21  ;;  %p2594_p10 = scmp.lt.u32.totalorder %s2590_s21, %s2755_s5 }
 0x28a   :  { %p2596_p11 = pnand %p2594_p10, %p2591_p9 }
 0x28c   :  { %2599 = shalt.err (!%p2596_p11)
}
 0x28d   :  { %2023 = dma.vmem_to_hbm [thread:$0]  %s2021_s1, 256, %s2755_s5, [#allocation4]  }
 0x28e   :  { %2606 = dma.done.wait [#allocation4], 256  }
 0x28f   :  { %2607 = vsyncadd [#allocation4], 4294967040 }
 0x290   :  { %2027 = vsyncpa [#allocation3], 1 }
 0x291   :  { %2028 = vsyncpa [#allocation6], 1 }
 0x292   :  { %2029 = vsyncpa [#allocation9], 1 }
 0x293   :  { %2030 = vsyncpa [#allocation4], 1 }

</bundles_post_ra>
